<compile_context>
chip_gen: v6e
topology: v6e:2x2x1
jax: 0.10.0
libtpu: 0.0.40
codegen_flags: <defaults>
</compile_context>

<pallas_src>
import functools

import jax
import jax.numpy as jnp
from jax.experimental import pallas as pl
from jax.experimental.pallas import tpu as pltpu

W3_LANE_PAD = 128  # internal MXU lane padding for the last layer (never written to HBM)


def mlp_kernel(x_ref, w1_ref, b1_ref, w2_ref, b2_ref, w3_ref, b3_ref, o_ref):
    # in-kernel f32 -> bf16 cast (saves a separate wrapper-side HBM pass)
    x = x_ref[...].astype(jnp.bfloat16)
    # fc1 + ReLU   (bf16 x bf16 -> f32 accumulate on the MXU)
    h1 = jnp.dot(x, w1_ref[...], preferred_element_type=jnp.float32)
    h1 = jnp.maximum(h1 + b1_ref[...], 0.0)
    # fc2 + ReLU
    h2 = jnp.dot(h1.astype(jnp.bfloat16), w2_ref[...],
                 preferred_element_type=jnp.float32)
    h2 = jnp.maximum(h2 + b2_ref[...], 0.0)
    # fc3 (no activation).  w3 is lane-padded to 128 for the MXU; only the first
    # OUT (=o_ref.shape[1]) columns are real — store just those (narrow HBM write).
    out = jnp.dot(h2.astype(jnp.bfloat16), w3_ref[...],
                  preferred_element_type=jnp.float32)
    o_ref[...] = (out[:, : o_ref.shape[1]] + b3_ref[...]).astype(o_ref.dtype)


def _round_up(a, m):
    return (a + m - 1) // m * m


@functools.partial(jax.jit, static_argnames=("tb_max",))
def simple_nn_forward(x, params, tb_max=2048):
    """x: (B, 20) f32.  params: (w1,b1,w2,b2,w3,b3) with wN:(in,out), bN:(1,out)."""
    w1, b1, w2, b2, w3, b3 = params
    B, IN = x.shape
    H1, H2, OUT = w1.shape[1], w2.shape[1], w3.shape[1]
    bf = jnp.bfloat16

    # --- lane-pad w3 for the MXU only (padded lanes never reach HBM output) --
    w3p = jnp.zeros((H2, W3_LANE_PAD), jnp.float32).at[:, :OUT].set(w3).astype(bf)
    w1b, w2b = w1.astype(bf), w2.astype(bf)

    # --- batch tiling: TB multiple of 8; pad B only when ragged -------------
    TB = tb_max if B >= tb_max else _round_up(B, 8)
    Bp = _round_up(B, TB)
    xp = x if Bp == B else jnp.zeros((Bp, IN), x.dtype).at[:B].set(x)
    nb = Bp // TB

    flops = 2 * Bp * (IN * H1 + H1 * H2 + H2 * OUT)
    bytes_accessed = (
        xp.size * 4 + Bp * OUT * 4                        # f32 activations in/out
        + (w1b.size + w2b.size + w3p.size) * 2            # bf16 weights
        + (b1.size + b2.size + b3.size) * 4               # f32 biases
    )
    cost = pl.CostEstimate(flops=flops, transcendentals=0,
                           bytes_accessed=bytes_accessed)

    out = pl.pallas_call(
        mlp_kernel,
        out_shape=jax.ShapeDtypeStruct((Bp, OUT), jnp.float32),
        grid=(nb,),
        in_specs=[
            pl.BlockSpec((TB, IN), lambda i: (i, 0)),      # x: tiled over batch (f32)
            pl.BlockSpec(w1b.shape, lambda i: (0, 0)),     # weights/biases stay
            pl.BlockSpec(b1.shape, lambda i: (0, 0)),      # VMEM-resident
            pl.BlockSpec(w2b.shape, lambda i: (0, 0)),
            pl.BlockSpec(b2.shape, lambda i: (0, 0)),
            pl.BlockSpec(w3p.shape, lambda i: (0, 0)),
            pl.BlockSpec(b3.shape, lambda i: (0, 0)),
        ],
        out_specs=pl.BlockSpec((TB, OUT), lambda i: (i, 0)),  # narrow (2-lane) output
        compiler_params=pltpu.CompilerParams(
            dimension_semantics=("parallel",),             # batch steps independent
            vmem_limit_bytes=32 * 1024 * 1024,             # headroom for TB up to ~4096
        ),
        cost_estimate=cost,
    )(xp, w1b, b1, w2b, b2, w3p, b3)

    return out if Bp == B else out[:B]


def init_params(key):
    """Deterministic init mimicking PyTorch nn.Linear default U[-1/sqrt(fan_in), ...]."""
    dims = [(20, 64), (64, 32), (32, 2)]
    params = []
    for fan_in, fan_out in dims:
        kw, kb, key = jax.random.split(key, 3)
        bound = 1.0 / jnp.sqrt(fan_in)
        w = jax.random.uniform(kw, (fan_in, fan_out), jnp.float32, -bound, bound)
        b = jax.random.uniform(kb, (1, fan_out), jnp.float32, -bound, bound)
        params += [w, b]
    return params


def reference_forward(x, params):
    """Pure-JAX reference mirroring the kernel's precision (bf16 dot inputs, f32 acc)."""
    w1, b1, w2, b2, w3, b3 = params
    bf = jnp.bfloat16
    h1 = jnp.maximum(
        jnp.dot(x.astype(bf), w1.astype(bf), preferred_element_type=jnp.float32) + b1, 0.0)
    h2 = jnp.maximum(
        jnp.dot(h1.astype(bf), w2.astype(bf), preferred_element_type=jnp.float32) + b2, 0.0)
    return jnp.dot(h2.astype(bf), w3.astype(bf), preferred_element_type=jnp.float32) + b3


if __name__ == "__main__":
    key = jax.random.PRNGKey(0)
    kx, kp = jax.random.split(key)
    B = 8
    x = jax.random.normal(kx, (B, 20), jnp.float32)
    params = init_params(kp)

    out = simple_nn_forward(x, params)
    out = jax.block_until_ready(out)

    ref = reference_forward(x, params)
    assert out.shape == (B, 2)
    assert jnp.allclose(out, ref, atol=1e-3, rtol=1e-3)

    # sanity vs. full-f32 math (loose tolerance for the bf16 dot inputs)
    w1, b1, w2, b2, w3, b3 = params
    f32_ref = jnp.maximum(jnp.maximum(x @ w1 + b1, 0.0) @ w2 + b2, 0.0) @ w3 + b3
    assert jnp.allclose(out, f32_ref, atol=5e-2, rtol=5e-2)

    print("KERNEL_OK")
</pallas_src>

<mosaic_0001>
module attributes {stable_mosaic.version = 11 : i64} {
  func.func @mlp_kernel(%arg0: i32, %arg1: memref<8x20xf32, #tpu.memory_space<vmem>>, %arg2: memref<20x64xbf16, #tpu.memory_space<vmem>>, %arg3: memref<1x64xf32, #tpu.memory_space<vmem>>, %arg4: memref<64x32xbf16, #tpu.memory_space<vmem>>, %arg5: memref<1x32xf32, #tpu.memory_space<vmem>>, %arg6: memref<32x128xbf16, #tpu.memory_space<vmem>>, %arg7: memref<1x2xf32, #tpu.memory_space<vmem>>, %arg8: memref<8x2xf32, #tpu.memory_space<vmem>>) attributes {dimension_semantics = [#tpu.dimension_semantics<parallel>], iteration_bounds = array<i64: 1>, scalar_prefetch = 0 : i64, scratch_operands = 0 : i64, tpu.core_type = #tpu.core_type<tc>, window_params = [{transform_indices = @transform_0, window_bounds = array<i64: 8, 20>}, {pipeline_mode = #tpu.pipeline_mode<synchronous>, transform_indices = @transform_1, window_bounds = array<i64: 20, 64>}, {pipeline_mode = #tpu.pipeline_mode<synchronous>, transform_indices = @transform_2, window_bounds = array<i64: 1, 64>}, {pipeline_mode = #tpu.pipeline_mode<synchronous>, transform_indices = @transform_3, window_bounds = array<i64: 64, 32>}, {pipeline_mode = #tpu.pipeline_mode<synchronous>, transform_indices = @transform_4, window_bounds = array<i64: 1, 32>}, {pipeline_mode = #tpu.pipeline_mode<synchronous>, transform_indices = @transform_5, window_bounds = array<i64: 32, 128>}, {pipeline_mode = #tpu.pipeline_mode<synchronous>, transform_indices = @transform_6, window_bounds = array<i64: 1, 2>}, {transform_indices = @transform_7, window_bounds = array<i64: 8, 2>}]} {
    %c0 = arith.constant 0 : index
    %c0_0 = arith.constant 0 : index
    %0 = vector.load %arg1[%c0, %c0_0] : memref<8x20xf32, #tpu.memory_space<vmem>>, vector<8x20xf32>
    %1 = arith.truncf %0 : vector<8x20xf32> to vector<8x20xbf16>
    %c0_1 = arith.constant 0 : index
    %c0_2 = arith.constant 0 : index
    %2 = vector.load %arg2[%c0_1, %c0_2] : memref<20x64xbf16, #tpu.memory_space<vmem>>, vector<20x64xbf16>
    %cst = arith.constant dense<0.000000e+00> : vector<8x64xf32>
    %3 = tpu.matmul %1, %2, %cst {dimension_numbers = #tpu.dot_dimension_numbers<[1], [0], [0], [1], [0, 0, 1, 1], [], []>} : vector<8x20xbf16>, vector<20x64xbf16>, vector<8x64xf32> -> vector<8x64xf32>
    %c0_3 = arith.constant 0 : index
    %c0_4 = arith.constant 0 : index
    %4 = vector.load %arg3[%c0_3, %c0_4] : memref<1x64xf32, #tpu.memory_space<vmem>>, vector<1x64xf32>
    %5 = vector.broadcast %4 : vector<1x64xf32> to vector<8x64xf32>
    %6 = arith.addf %3, %5 : vector<8x64xf32>
    %cst_5 = arith.constant 0.000000e+00 : f32
    %7 = vector.broadcast %cst_5 : f32 to vector<8x64xf32>
    %8 = arith.maximumf %6, %7 : vector<8x64xf32>
    %9 = arith.truncf %8 : vector<8x64xf32> to vector<8x64xbf16>
    %c0_6 = arith.constant 0 : index
    %c0_7 = arith.constant 0 : index
    %10 = vector.load %arg4[%c0_6, %c0_7] : memref<64x32xbf16, #tpu.memory_space<vmem>>, vector<64x32xbf16>
    %cst_8 = arith.constant dense<0.000000e+00> : vector<8x32xf32>
    %11 = tpu.matmul %9, %10, %cst_8 {dimension_numbers = #tpu.dot_dimension_numbers<[1], [0], [0], [1], [0, 0, 1, 1], [], []>} : vector<8x64xbf16>, vector<64x32xbf16>, vector<8x32xf32> -> vector<8x32xf32>
    %c0_9 = arith.constant 0 : index
    %c0_10 = arith.constant 0 : index
    %12 = vector.load %arg5[%c0_9, %c0_10] : memref<1x32xf32, #tpu.memory_space<vmem>>, vector<1x32xf32>
    %13 = vector.broadcast %12 : vector<1x32xf32> to vector<8x32xf32>
    %14 = arith.addf %11, %13 : vector<8x32xf32>
    %cst_11 = arith.constant 0.000000e+00 : f32
    %15 = vector.broadcast %cst_11 : f32 to vector<8x32xf32>
    %16 = arith.maximumf %14, %15 : vector<8x32xf32>
    %17 = arith.truncf %16 : vector<8x32xf32> to vector<8x32xbf16>
    %c0_12 = arith.constant 0 : index
    %c0_13 = arith.constant 0 : index
    %18 = vector.load %arg6[%c0_12, %c0_13] : memref<32x128xbf16, #tpu.memory_space<vmem>>, vector<32x128xbf16>
    %cst_14 = arith.constant dense<0.000000e+00> : vector<8x128xf32>
    %19 = tpu.matmul %17, %18, %cst_14 {dimension_numbers = #tpu.dot_dimension_numbers<[1], [0], [0], [1], [0, 0, 1, 1], [], []>} : vector<8x32xbf16>, vector<32x128xbf16>, vector<8x128xf32> -> vector<8x128xf32>
    %20 = vector.extract_strided_slice %19 {offsets = [0, 0], sizes = [8, 2], strides = [1, 1]} : vector<8x128xf32> to vector<8x2xf32>
    %c0_15 = arith.constant 0 : index
    %c0_16 = arith.constant 0 : index
    %21 = vector.load %arg7[%c0_15, %c0_16] : memref<1x2xf32, #tpu.memory_space<vmem>>, vector<1x2xf32>
    %22 = vector.broadcast %21 : vector<1x2xf32> to vector<8x2xf32>
    %23 = arith.addf %20, %22 : vector<8x2xf32>
    %c0_17 = arith.constant 0 : index
    %c0_18 = arith.constant 0 : index
    %24 = vector.load %arg8[%c0_17, %c0_18] : memref<8x2xf32, #tpu.memory_space<vmem>>, vector<8x2xf32>
    tpu.vector_store %arg8[%c0_17, %c0_18], %23 {strides = array<i32>} : memref<8x2xf32, #tpu.memory_space<vmem>>, vector<8x2xf32>,
    return
  }
  func.func @transform_0(%arg0: i32) -> (i32, i32) {
    %c0_i32 = arith.constant 0 : i32
    %c0_i32_0 = arith.constant 0 : i32
    return %arg0, %c0_i32 : i32, i32
  }
  func.func @transform_1(%arg0: i32) -> (i32, i32) {
    %c0_i32 = arith.constant 0 : i32
    %c0_i32_0 = arith.constant 0 : i32
    %c0_i32_1 = arith.constant 0 : i32
    return %c0_i32, %c0_i32_0 : i32, i32
  }
  func.func @transform_2(%arg0: i32) -> (i32, i32) {
    %c0_i32 = arith.constant 0 : i32
    %c0_i32_0 = arith.constant 0 : i32
    %c0_i32_1 = arith.constant 0 : i32
    return %c0_i32, %c0_i32_0 : i32, i32
  }
  func.func @transform_3(%arg0: i32) -> (i32, i32) {
    %c0_i32 = arith.constant 0 : i32
    %c0_i32_0 = arith.constant 0 : i32
    %c0_i32_1 = arith.constant 0 : i32
    return %c0_i32, %c0_i32_0 : i32, i32
  }
  func.func @transform_4(%arg0: i32) -> (i32, i32) {
    %c0_i32 = arith.constant 0 : i32
    %c0_i32_0 = arith.constant 0 : i32
    %c0_i32_1 = arith.constant 0 : i32
    return %c0_i32, %c0_i32_0 : i32, i32
  }
  func.func @transform_5(%arg0: i32) -> (i32, i32) {
    %c0_i32 = arith.constant 0 : i32
    %c0_i32_0 = arith.constant 0 : i32
    %c0_i32_1 = arith.constant 0 : i32
    return %c0_i32, %c0_i32_0 : i32, i32
  }
  func.func @transform_6(%arg0: i32) -> (i32, i32) {
    %c0_i32 = arith.constant 0 : i32
    %c0_i32_0 = arith.constant 0 : i32
    %c0_i32_1 = arith.constant 0 : i32
    return %c0_i32, %c0_i32_0 : i32, i32
  }
  func.func @transform_7(%arg0: i32) -> (i32, i32) {
    %c0_i32 = arith.constant 0 : i32
    %c0_i32_0 = arith.constant 0 : i32
    return %arg0, %c0_i32 : i32, i32
  }
}

</mosaic_0001>

<bundles_post_ra>
// kernel: simple_nn_forward.1
= control target key start
LH: loop header
LB: loop body
LE: loop exit
PB: predicated region body
PF: predicated region fallthrough
CT: control target
= control target key end

     0   :  { %vm52_vm0 = vcmask 1041408   ;;  %v320_v0 = vmov 0.0   ;;  %vm321_vm1 = vmmov 0   ;;  %vm48_vm2 = vcmask 162816   ;;  %s404_s1 = inlined_call_operand.vmem [shape: bf16[20,64], index: 1, kind: input, shape index: {}]   ;;  %s405_s3 = inlined_call_operand.vmem [shape: bf16[64,32], index: 3, kind: input, shape index: {}]   ;;  %s406_s0 = inlined_call_operand.vmem [shape: f32[8,20], index: 0, kind: input, shape index: {}]   ;;  %s407_s5 = inlined_call_operand.vmem [shape: bf16[32,128], index: 5, kind: input, shape index: {}]   ;;  %s408_s2 = inlined_call_operand.vmem [shape: f32[1,64], index: 2, kind: input, shape index: {}]   ;;  %s409_s4 = inlined_call_operand.vmem [shape: f32[1,32], index: 4, kind: input, shape index: {}]   ;;  %s410_s6 = inlined_call_operand.vmem [shape: f32[1,2], index: 6, kind: input, shape index: {}]   ;;  %s411_s7 = inlined_call_operand.vmem [shape: f32[8,2], index: 7, kind: output, shape index: {}]  }
   0x1   :  { %282 = vmatprep.subr.bf16.mxu0 %v320_v0  ;;  %v312_v1 = vld [vmem:[%s404_s1 + $0x8] ss:$0 sps:$4 sm:$0x33]   ;;  %286 = vmatprep.mubr.msk.bf16.mxu0 %vm321_vm1, %v320_v0  ;;  %v313_v2 = vld [vmem:[%s404_s1] sm:$0xff]   ;;  %v314_v4 = vld [vmem:[%s405_s3 + $0x18] sm:$0xff]   ;;  %vm137_vm3 = vcmask 523264  }
   0x2   :  { %290 = vmatprep.subr.bf16.mxu1 %v320_v0  ;;  %298 = vmatprep.mubr.msk.bf16.mxu1 %vm321_vm1, %v320_v0  ;;  %v54_v3 = vsel %vm52_vm0, %v312_v1, 0  ;;  %v27_v5 = vld [vmem:[%s406_s0] sm:$0xff]  ;;  %v315_v6 = vld [vmem:[%s405_s3 + $0x10] sm:$0xff]   ;;  %v316_v8 = vld [vmem:[%s405_s3 + $0x8] sm:$0xff]   ;;  %vm199_vm4 = vcmask 261120   ;;  %vm251_vm5 = vcmask 15360  }
   0x3   :  { %283 = vmatpush3.bf16.msra.mxu0 %v54_v3  ;;  %291 = vmatpush3.bf16.msra.mxu1 %v314_v4  ;;  %v28_v7 = vpack.c.bf16 %v27_v5, %v27_v5  ;;  %v317_v9 = vld [vmem:[%s405_s3] sm:$0xff]   ;;  %v318_v10 = vld [vmem:[%s407_s5 + $0x8] sm:$0xff]  }
   0x4   :  { %284 = vmatprep.subr.bf16.mxu0 %v320_v0  ;;  %292 = vmatprep.subr.bf16.mxu1 %v320_v0  ;;  %v257_v11 = vld [vmem:[%s408_s2] ss:$0 sm:$0xff] }
   0x5   :  { %v319_v19 = vld [vmem:[%s407_s5] sm:$0xff]  }
   0x6   :  { %v261_v20 = vld [vmem:[%s409_s4] ss:$0 sm:$0xff] }
   0x7   :  { %285 = vmatpush3.bf16.msra.mxu0 %v313_v2  ;;  %293 = vmatpush3.bf16.msra.mxu1 %v315_v6  ;;  %v270_v28 = vld [vmem:[%s410_s6] ss:$0 sm:$0xff] }
   0x8   :  { %302 = vmatprep.subr.bf16.mxu0 %v320_v0  ;;  %294 = vmatprep.subr.bf16.mxu1 %v320_v0 }
   0xa   :  { %287 = vmatmul.mubr.msk.bf16.vlgmr.msra.gmra.mxu0 %vm48_vm2, %v28_v7 }
   0xb   :  { %306 = vmatprep.mubr.msk.bf16.mxu0 %vm321_vm1, %v320_v0  ;;  %295 = vmatpush3.bf16.msra.mxu1 %v316_v8 }
   0xc   :  { %296 = vmatprep.subr.bf16.mxu1 %v320_v0  ;;  %303 = vmatpush3.bf16.msra.mxu0 %v318_v10 }
   0xd   :  { %304 = vmatprep.subr.bf16.mxu0 %v320_v0 }
   0xf   :  { %297 = vmatpush3.bf16.msra.mxu1 %v317_v9 }
  0x10   :  { %305 = vmatpush3.bf16.msra.mxu0 %v319_v19 }
  0xca   :  { %v90_v12 = vpop.f32.mrf.mxu0 }
  0xcb   :  { %v91_v13 = vadd.f32 %v257_v11, %v90_v12 }
  0xcc   :  { %v288_v14 = vpop.f32.mrf.mxu0 }
  0xcd   :  { %v96_v15 = vmax.f32 %v91_v13, 0.0 }
  0xce   :  { %v93_v16 = vpop.f32.mrf.mxu0 }
  0xcf   :  { %v97_v17 = vpack.c.bf16 %v96_v15, %v96_v15 }
  0xd0   :  { %v289_v18 = vpop.f32.mrf.mxu0 }
  0xd1   :  { %299 = vmatmul.mubr.msk.bf16.vlgmr.msra.gmra.mxu1 %vm137_vm3, %v97_v17 }
 0x191   :  { %v175_v21 = vpop.f32.mrf.mxu1 }
 0x192   :  { %v176_v22 = vadd.f32 %v261_v20, %v175_v21 }
 0x193   :  { %v300_v23 = vpop.f32.mrf.mxu1 }
 0x194   :  { %v181_v24 = vmax.f32 %v176_v22, 0.0 }
 0x195   :  { %v178_v25 = vpop.f32.mrf.mxu1 }
 0x196   :  { %v182_v26 = vpack.c.bf16 %v181_v24, %v181_v24 }
 0x197   :  { %v301_v27 = vpop.f32.mrf.mxu1 }
 0x198   :  { %307 = vmatmul.mubr.msk.bf16.vlgmr.msra.gmra.mxu0 %vm199_vm4, %v182_v26 }
 0x258   :  { %v237_v29 = vpop.f32.mrf.mxu0 }
 0x259   :  { %v250_v30 = vadd.f32 %v270_v28, %v237_v29 }
 0x25a   :  { %v308_v31 = vpop.f32.mrf.mxu0 }
 0x25b   :  { %252 = vst.msk [vmem:[%s411_s7] sm:$0xff] %vm251_vm5, %v250_v30 }
 0x25c   :  { %v240_v32 = vpop.f32.mrf.mxu0 }
 0x25e   :  { %v309_v33 = vpop.f32.mrf.mxu0 }

</bundles_post_ra>
